<compile_context>
chip_gen: v6e
topology: v6e:2x2x1
jax: 0.10.0
libtpu: 0.0.40
codegen_flags: <defaults>
</compile_context>

<pallas_src>
import functools

import jax
import jax.numpy as jnp
from jax.experimental import pallas as pl
from jax.experimental.pallas import tpu as pltpu

N_OPS = 3          # synthetic number of candidate ops per MixedOp
EXPANSION = 4
BN_EPS = 1e-5


def _round_up(x, m):
    return ((x + m - 1) // m) * m


# -----------------------------------------------------------------------------
# Pallas kernel: fused folded-conv matmul + folded-BN bias + optional residual + optional ReLU
#     out = relu?( patches @ W_fold + bias_fold (+ residual) )
# -----------------------------------------------------------------------------
def _conv_bn_kernel(patches_ref, w_ref, bias_ref, *rest, apply_relu, has_residual):
    if has_residual:
        res_ref, out_ref = rest
    else:
        (out_ref,) = rest

    # Single MXU matmul: bf16 inputs, f32 accumulation.
    y = jnp.dot(patches_ref[...], w_ref[...], preferred_element_type=jnp.float32)
    y = y + bias_ref[...]                    # f32 epilogue
    if has_residual:
        y = y + res_ref[...]
    if apply_relu:
        y = jnp.maximum(y, 0.0)
    out_ref[...] = y.astype(out_ref.dtype)


def conv_bn_call(patches, w_fold, bias_fold, residual=None, apply_relu=True,
                 out_dtype=jnp.float32, tile_m=512, return_padded=False):
    """patches: [M, Kd]; w_fold: [Kd, Cout] f32; bias_fold: [1, Cout] f32;
       residual: [M, Cout] or already-padded [Mp, Cn] (f32) or None.
       Returns [M, Cout] (or the padded [Mp, Cn] block if return_padded=True)."""
    M, Kd = patches.shape
    Cout = w_fold.shape[1]

    # Lane-dense output: pad Cout to a multiple of 128.
    Cn = _round_up(Cout, 128)
    tn = 256 if Cn % 256 == 0 else 128

    # M tiling: pad to a tile multiple (no divisibility assert); prefer >= 2 M tiles
    # so the grid can shard across v7x's two TensorCores.
    tm = min(tile_m, _round_up(M, 128))
    if _round_up(M, tm) // tm < 2 and M > 128:
        tm = max(128, _round_up((M + 1) // 2, 128))
    Mp = _round_up(M, tm)

    patches_p = jnp.pad(patches, ((0, Mp - M), (0, 0))).astype(jnp.bfloat16)
    w_p = jnp.pad(w_fold, ((0, 0), (0, Cn - Cout))).astype(jnp.bfloat16)
    bias_p = jnp.pad(bias_fold, ((0, 0), (0, Cn - Cout))).astype(jnp.float32)

    in_specs = [
        pl.BlockSpec((tm, Kd), lambda i, j: (i, 0)),   # patches tile (bf16)
        pl.BlockSpec((Kd, tn), lambda i, j: (0, j)),   # folded weights (bf16)
        pl.BlockSpec((1, tn), lambda i, j: (0, j)),    # folded bias (f32)
    ]
    args = [patches_p, w_p, bias_p]
    if residual is not None:
        if residual.shape != (Mp, Cn):
            mr, cr = residual.shape
            residual = jnp.pad(residual, ((0, Mp - mr), (0, Cn - cr)))
        res_p = residual.astype(jnp.float32)
        in_specs.append(pl.BlockSpec((tm, tn), lambda i, j: (i, j)))
        args.append(res_p)

    # Double-buffered VMEM footprint + headroom, capped at v7x's 64 MiB physical VMEM.
    out_bytes = jnp.dtype(out_dtype).itemsize
    vmem_bytes = 2 * (tm * Kd * 2 + Kd * tn * 2 + tn * 4 + tm * tn * out_bytes
                      + (tm * tn * 4 if residual is not None else 0)) + (2 << 20)
    vmem_limit = int(min(max(vmem_bytes, 32 << 20), 64 << 20))

    kernel = functools.partial(_conv_bn_kernel, apply_relu=apply_relu,
                               has_residual=residual is not None)
    out = pl.pallas_call(
        kernel,
        out_shape=jax.ShapeDtypeStruct((Mp, Cn), out_dtype),
        grid=(Mp // tm, Cn // tn),
        in_specs=in_specs,
        out_specs=pl.BlockSpec((tm, tn), lambda i, j: (i, j)),
        compiler_params=pltpu.CompilerParams(
            dimension_semantics=("parallel", "parallel"),
            vmem_limit_bytes=vmem_limit),
    )(*args)
    if return_padded:
        return out
    return out[:M, :Cout]


# -----------------------------------------------------------------------------
# Glue: im2col (3x3 only), alpha/BN folding, parameter init, Bottleneck forward
# -----------------------------------------------------------------------------
def im2col_nhwc(x, k, stride, pad):
    """x: [N,H,W,C] -> patches [N*Ho*Wo, k*k*C] with (kh, kw, C) minor ordering."""
    N, H, W, C = x.shape
    xp = jnp.pad(x, ((0, 0), (pad, pad), (pad, pad), (0, 0)))
    Ho = (H + 2 * pad - k) // stride + 1
    Wo = (W + 2 * pad - k) // stride + 1
    cols = []
    for dy in range(k):
        for dx in range(k):
            cols.append(xp[:, dy:dy + stride * Ho:stride, dx:dx + stride * Wo:stride, :])
    p = jnp.stack(cols, axis=3)                       # [N, Ho, Wo, k*k, C]
    return p.reshape(N * Ho * Wo, k * k * C), Ho, Wo


def fold_mixed_bn(mixed, bn, alpha):
    """Fold soft-mode mixture (sum_o alpha_o * conv_o(x)) and eval-mode BN into a single
       [k*k*Cin, Cout] weight and [1, Cout] bias (exact for soft mode + eval BN, f32)."""
    w = mixed['w']                                    # [n_ops, Cout, Cin, k, k] (OIHW per op)
    b = mixed['b']                                    # [n_ops, Cout]
    n_ops, cout, cin, k, _ = w.shape
    a = jnp.asarray(alpha, jnp.float32)
    w_mix = jnp.tensordot(a, w, axes=1)               # [Cout, Cin, k, k]
    b_mix = jnp.tensordot(a, b, axes=1)               # [Cout]
    scale = bn['gamma'] * jax.lax.rsqrt(bn['var'] + BN_EPS)
    shift = bn['beta'] - bn['mean'] * scale
    # OIHW -> [(kh, kw, Cin), Cout] to match patch minor ordering; fold BN scale into columns.
    w2 = jnp.transpose(w_mix, (2, 3, 1, 0)).reshape(k * k * cin, cout)
    w_fold = w2 * scale[None, :]
    bias_fold = (b_mix * scale + shift).reshape(1, cout)
    return w_fold, bias_fold


def _randn(key, shape, scale=0.1):
    return scale * jax.random.normal(key, shape, dtype=jnp.float32)


def init_mixed_op(key, cin, cout, k, n_ops=N_OPS):
    kw, kb = jax.random.split(key)
    return {'w': _randn(kw, (n_ops, cout, cin, k, k)),   # PyTorch OIHW per op
            'b': _randn(kb, (n_ops, cout))}


def init_bn(key, c):
    k1, k2, k3, k4 = jax.random.split(key, 4)
    return {'gamma': 1.0 + 0.1 * jax.random.normal(k1, (c,), jnp.float32),
            'beta': 0.1 * jax.random.normal(k2, (c,), jnp.float32),
            'mean': 0.1 * jax.random.normal(k3, (c,), jnp.float32),
            'var': 1.0 + 0.1 * jnp.abs(jax.random.normal(k4, (c,), jnp.float32))}


def init_bottleneck(key, in_planes, planes, stride):
    ks = jax.random.split(key, 8)
    params = {
        'conv1': init_mixed_op(ks[0], in_planes, planes, 1),
        'bn1': init_bn(ks[1], planes),
        'conv2': init_mixed_op(ks[2], planes, planes, 3),
        'bn2': init_bn(ks[3], planes),
        'conv3': init_mixed_op(ks[4], planes, EXPANSION * planes, 1),
        'bn3': init_bn(ks[5], EXPANSION * planes),
    }
    if stride != 1 or in_planes != EXPANSION * planes:
        params['shortcut_conv'] = init_mixed_op(ks[6], in_planes, EXPANSION * planes, 1, n_ops=1)
        params['shortcut_bn'] = init_bn(ks[7], EXPANSION * planes)
    return params


def bottleneck_forward(params, x_nchw, alpha_lst, alpha_param, stride):
    """Mirrors Bottleneck.forward in the default 'soft' MixedOp mode (alpha_param unused)."""
    del alpha_param
    x = jnp.transpose(x_nchw, (0, 2, 3, 1)).astype(jnp.float32)   # -> NHWC
    N, H, W, Cin = x.shape

    def patches_1x1(inp, s):
        # k=1 conv needs no im2col: strided spatial subsample + reshape only.
        v = inp[:, ::s, ::s, :] if s != 1 else inp
        n, h, w, c = v.shape
        return v.reshape(n * h * w, c), h, w

    def run_stage(inp, mixed, bn, alpha, k, s, pad, relu, residual=None,
                  out_dtype=jnp.float32, return_padded=False):
        if k == 1:
            patches, Ho, Wo = patches_1x1(inp, s)
        else:
            patches, Ho, Wo = im2col_nhwc(inp, k, s, pad)
        w_fold, bias_fold = fold_mixed_bn(mixed, bn, alpha)
        out_flat = conv_bn_call(patches, w_fold, bias_fold,
                                residual=residual, apply_relu=relu,
                                out_dtype=out_dtype, return_padded=return_padded)
        return out_flat, Ho, Wo

    # Shortcut branch (projection conv1x1 + BN, or identity).  The projection kernel keeps its
    # lane-padded [Mp, Cn] output so the conv3 kernel can consume it as the residual directly
    # (no HBM slice + re-pad round trip).
    if 'shortcut_conv' in params:
        sc_res, _, _ = run_stage(x, params['shortcut_conv'], params['shortcut_bn'],
                                 jnp.ones((1,), jnp.float32), 1, stride, 0,
                                 relu=False, out_dtype=jnp.float32, return_padded=True)
    else:
        sc_res = x.reshape(-1, Cin)

    # conv1 / conv2 outputs are written directly in bf16 (they are bf16 matmul inputs anyway).
    out1, H1, W1 = run_stage(x, params['conv1'], params['bn1'], alpha_lst[0],
                             1, 1, 0, relu=True, out_dtype=jnp.bfloat16)
    out1 = out1.reshape(N, H1, W1, -1)
    out2, H2, W2 = run_stage(out1, params['conv2'], params['bn2'], alpha_lst[1],
                             3, stride, 1, relu=True, out_dtype=jnp.bfloat16)
    out2 = out2.reshape(N, H2, W2, -1)
    # conv3 + bn3 + residual add + final relu fused into the last kernel call (f32 output).
    out3, H3, W3 = run_stage(out2, params['conv3'], params['bn3'], alpha_lst[2],
                             1, 1, 0, relu=True, residual=sc_res, out_dtype=jnp.float32)
    out = out3.reshape(N, H3, W3, -1)
    return jnp.transpose(out, (0, 3, 1, 2))                        # back to NCHW


# -----------------------------------------------------------------------------
# Pure-JAX reference (same math, lax.conv, f32) for a sanity check
# -----------------------------------------------------------------------------
def reference_forward(params, x, alpha_lst, stride):
    def conv(x, w, b, s, pad):
        y = jax.lax.conv_general_dilated(x, w, (s, s), ((pad, pad), (pad, pad)),
                                         dimension_numbers=('NCHW', 'OIHW', 'NCHW'),
                                         precision=jax.lax.Precision.HIGHEST)
        return y + b[None, :, None, None]

    def mixed(x, p, alpha, s, pad):
        out = 0.0
        for i in range(p['w'].shape[0]):
            out = out + alpha[i] * conv(x, p['w'][i], p['b'][i], s, pad)
        return out

    def bn(x, p):
        inv = p['gamma'] / jnp.sqrt(p['var'] + BN_EPS)
        return x * inv[None, :, None, None] + (p['beta'] - p['mean'] * inv)[None, :, None, None]

    out = jax.nn.relu(bn(mixed(x, params['conv1'], alpha_lst[0], 1, 0), params['bn1']))
    out = jax.nn.relu(bn(mixed(out, params['conv2'], alpha_lst[1], stride, 1), params['bn2']))
    out = bn(mixed(out, params['conv3'], alpha_lst[2], 1, 0), params['bn3'])
    if 'shortcut_conv' in params:
        sc = bn(conv(x, params['shortcut_conv']['w'][0], params['shortcut_conv']['b'][0], stride, 0),
                params['shortcut_bn'])
    else:
        sc = x
    return jax.nn.relu(out + sc)


# -----------------------------------------------------------------------------
if __name__ == "__main__":
    key = jax.random.PRNGKey(0)
    k_param, k_x, k_a, k_ap = jax.random.split(key, 4)

    N, in_planes, planes, H, W, stride = 2, 4, 4, 16, 16, 1
    params = init_bottleneck(k_param, in_planes, planes, stride)

    x = jax.random.normal(k_x, (N, in_planes, H, W), dtype=jnp.float32)
    alpha_lst = [jax.nn.softmax(jax.random.normal(k, (N_OPS,), jnp.float32))
                 for k in jax.random.split(k_a, 3)]
    alpha_param = [jax.random.normal(k, (N_OPS,), jnp.float32)
                   for k in jax.random.split(k_ap, 3)]      # unused in soft mode

    out = bottleneck_forward(params, x, alpha_lst, alpha_param, stride)
    out = jax.block_until_ready(out)

    ref = jax.block_until_ready(reference_forward(params, x, alpha_lst, stride))
    assert out.shape == (N, EXPANSION * planes, H // stride, W // stride), out.shape
    max_err = float(jnp.max(jnp.abs(out - ref)))
    # bf16 matmul inputs / bf16 intermediate activations with f32 accumulation
    # -> slightly relaxed tolerance vs the f32 reference
    assert max_err < 2e-2, f"mismatch vs reference: {max_err}"

    print("KERNEL_OK")
</pallas_src>

<mosaic_0001>
module attributes {stable_mosaic.version = 11 : i64} {
  func.func @_conv_bn_kernel(%arg0: i32, %arg1: i32, %arg2: memref<256x4xbf16, #tpu.memory_space<vmem>>, %arg3: memref<4x128xbf16, #tpu.memory_space<vmem>>, %arg4: memref<1x128xf32, #tpu.memory_space<vmem>>, %arg5: memref<256x128xf32, #tpu.memory_space<vmem>>) attributes {dimension_semantics = [#tpu.dimension_semantics<parallel>, #tpu.dimension_semantics<parallel>], iteration_bounds = array<i64: 2, 1>, scalar_prefetch = 0 : i64, scratch_operands = 0 : i64, tpu.core_type = #tpu.core_type<tc>, window_params = [{transform_indices = @transform_0, window_bounds = array<i64: 256, 4>}, {transform_indices = @transform_1, window_bounds = array<i64: 4, 128>}, {transform_indices = @transform_2, window_bounds = array<i64: 1, 128>}, {transform_indices = @transform_3, window_bounds = array<i64: 256, 128>}]} {
    %c0 = arith.constant 0 : index
    %c0_0 = arith.constant 0 : index
    %0 = vector.load %arg2[%c0, %c0_0] : memref<256x4xbf16, #tpu.memory_space<vmem>>, vector<256x4xbf16>
    %c0_1 = arith.constant 0 : index
    %c0_2 = arith.constant 0 : index
    %1 = vector.load %arg3[%c0_1, %c0_2] : memref<4x128xbf16, #tpu.memory_space<vmem>>, vector<4x128xbf16>
    %cst = arith.constant dense<0.000000e+00> : vector<256x128xf32>
    %2 = tpu.matmul %0, %1, %cst {dimension_numbers = #tpu.dot_dimension_numbers<[1], [0], [0], [1], [0, 0, 1, 1], [], []>} : vector<256x4xbf16>, vector<4x128xbf16>, vector<256x128xf32> -> vector<256x128xf32>
    %c0_3 = arith.constant 0 : index
    %c0_4 = arith.constant 0 : index
    %3 = vector.load %arg4[%c0_3, %c0_4] : memref<1x128xf32, #tpu.memory_space<vmem>>, vector<1x128xf32>
    %4 = vector.broadcast %3 : vector<1x128xf32> to vector<256x128xf32>
    %5 = arith.addf %2, %4 : vector<256x128xf32>
    %c0_5 = arith.constant 0 : index
    %c0_6 = arith.constant 0 : index
    %6 = vector.load %arg5[%c0_5, %c0_6] : memref<256x128xf32, #tpu.memory_space<vmem>>, vector<256x128xf32>
    tpu.vector_store %arg5[%c0_5, %c0_6], %5 {strides = array<i32>} : memref<256x128xf32, #tpu.memory_space<vmem>>, vector<256x128xf32>,
    return
  }
  func.func @transform_0(%arg0: i32, %arg1: i32) -> (i32, i32) {
    %c0_i32 = arith.constant 0 : i32
    %c0_i32_0 = arith.constant 0 : i32
    return %arg0, %c0_i32 : i32, i32
  }
  func.func @transform_1(%arg0: i32, %arg1: i32) -> (i32, i32) {
    %c0_i32 = arith.constant 0 : i32
    %c0_i32_0 = arith.constant 0 : i32
    return %c0_i32, %arg1 : i32, i32
  }
  func.func @transform_2(%arg0: i32, %arg1: i32) -> (i32, i32) {
    %c0_i32 = arith.constant 0 : i32
    %c0_i32_0 = arith.constant 0 : i32
    return %c0_i32, %arg1 : i32, i32
  }
  func.func @transform_3(%arg0: i32, %arg1: i32) -> (i32, i32) {
    %c0_i32 = arith.constant 0 : i32
    return %arg0, %arg1 : i32, i32
  }
}

</mosaic_0001>

<bundles_post_ra>
// kernel: tpu_custom_call.1
= control target key start
LH: loop header
LB: loop body
LE: loop exit
PB: predicated region body
PF: predicated region fallthrough
CT: control target
= control target key end

     0   :  { %8 = vsyncpa [#allocation3], 0  ;;  %s1202_s0 = inlined_call_operand.vmem [shape: bf16[512,4], index: 0, kind: input, shape index: {}]   ;;  %s1203_s1 = inlined_call_operand.vmem [shape: bf16[4,128], index: 1, kind: input, shape index: {}]   ;;  %s1204_s2 = inlined_call_operand.vmem [shape: f32[1,128], index: 2, kind: input, shape index: {}]   ;;  %s1205_s3 = inlined_call_operand.hbm [shape: f32[512,128], index: 3, kind: output, shape index: {}]  }
   0x1   :  { %10 = vsyncpa [#allocation3 + $0x1], 0  ;;  %s976_s12 = smov 0   ;;  %s978_s13 = smov 0  }
   0x2   :  { %s980_s14 = smov 0   ;;  %s982_s15 = smov 0  }
   0x3   :  { %s984_s16 = smov 0   ;;  %s986_s17 = smov 0  }
   0x4 LB: > { %s698_s18 = sadd.s32 4294967295, %s951_s17   ;;  %s699_s19 = sadd.s32 4294967294, %s951_s17   ;;  %s951_s17 = sphi %s986_s17, %s16_s17   ;;  %s947_s16 = sphi %s984_s16, %s1212_s16   ;;  %s943_s15 = sphi %s982_s15, %s1211_s15   ;;  %s939_s14 = sphi %s980_s14, %s1210_s14   ;;  %s935_s13 = sphi %s978_s13, %s1209_s13   ;;  %s931_s12 = sphi %s976_s12, %s1208_s12  }
   0x5   : > { %s28_s20 = sadd.s32 1, %s947_s16  ;;  %s115_s21 = sadd.s32 1, %s939_s14 }
   0x6   : > { %p30_p0 = scmp.ge.s32.totalorder %s28_s20, 2  ;;  %p125_p1 = scmp.ne.s32.totalorder %s939_s14, %s935_s13 }
   0x7   : > { %p126_p2 = scmp.eq.s32.totalorder %s698_s18, 1  ;;  %p131_p3 = scmp.ne.s32.totalorder %s935_s13, %s931_s12 }
   0x8   : > { %s1214_s20 = smov (%p30_p0, %s28_s20), 0  ;;  %p132_p5 = scmp.eq.s32.totalorder %s699_s19, 1 }
   0x9   : > { %p1016_p4 = por %p126_p2, %p125_p1  ;;  %s110_s23 = ssub.s32 %s947_s16, %s1214_s20 }
   0xa   : > { %p704_p6 = scmp.ge.s32.totalorder %s951_s17, 1  ;;  %p113_p7 = scmp.eq.s32.totalorder %s110_s23, 0 }
   0xb   : > { %p1023_p8 = por %p132_p5, %p131_p3  ;;  %p172_p9 = scmp.lt.s32.totalorder %s951_s17, 3 }
   0xc   : > { %s1029_s25 = scalar_select %p113_p7, %s939_s14, %s115_s21  }
   0xd   : > { %p173_p10 = pnand %p704_p6, %p172_p9 }
   0xe   : > { %s706_s28 = sshll.u32 (!%p173_p10), %s943_s15, 5  ;;  %s200_s6 = sand.u32 (!%p173_p10), 1, %s935_s13  }
   0xf   : > { %176 = sbr.rel (%p173_p10) target bundleno = 265 (0x109), region = 32  ;;  %p204_p11 = scmp.lt.s32.totalorder (!%p173_p10), %s706_s28, 63 }
  0x10   : > { %s705_s7 = sshll.u32 (!%p173_p10), %s200_s6, 8  ;;  %s746_s11 = sshll.u32 (!%p173_p10), %s943_s15, 12 }
  0x11   : > { %s1082_s10 = scalar_lea.vmem (!%p173_p10), [#allocation2], %s705_s7  ;;  %s1147_s15 = scalar_lea.hbm (!%p173_p10), %s1205_s3, %s746_s11 }
  0x12   : > { %s599_s18 = sshll.u32 (!%p173_p10), %s1082_s10, 4  ;;  %s1157_s23 = scalar_lea.sflag (!%p173_p10), [#allocation3], %s200_s6  ;;  %s1149_s18 = int_to_ptr.vmem [resolvable:$true] %s599_s18 }
  0x13   : > { %s875_s26 = scalar_lea.vmem (!%p173_p10), %s1149_s18, 4096  ;;  %s953_s27 = smov (!%p173_p10), [#allocation2]  }
  0x14   : > { %v250_v0 = vld [vmem:[%s1203_s1] sm:$0x3]  ;;  %vm387_vm0 = vcmask 1041408   ;;  %s1216_s28 = smov (!%p204_p11, %s706_s28), 63  ;;  %vm338_vm1 = vcmask 31744   ;;  %p876_p12 = scmp.ne.s32.totalorder %s1149_s18, %s875_s26 }
  0x15   : > { %800 = vmatprep.subr.msk.bf16.mxu0 %vm387_vm0, %v250_v0  ;;  %801 = vmatprep.subr.msk.bf16.mxu1 %vm387_vm0, %v250_v0  ;;  %v389_v1 = vsel %vm387_vm0, %v250_v0, 0  ;;  %s707_s29 = sshll.u32 %s1216_s28, 2  ;;  %v1078_v18 = vld [vmem:[%s1204_s2] ss:$0 sm:$0xff]  ;;  %s879_s28 = sshll.u32 %s953_s27, 4  ;;  %s880_s28 = int_to_ptr.vmem [resolvable:$false] %s879_s28 }
  0x16   : > { %765 = vmatpush3.bf16.msra.mxu0 %v389_v1  ;;  %799 = vmatpush3.bf16.msra.mxu1 %v389_v1  ;;  %s1038_s5 = scalar_lea.vmem %s1202_s0, %s707_s29  ;;  %p877_p13 = pnand %p876_p12, %p1016_p4 }
  0x17   : > { %v859_v2 = vld [vmem:[%s1038_s5] sm:$0xff]   ;;  %v861_v4 = vld [vmem:[%s1038_s5 + $0x8] sm:$0xff]   ;;  %v863_v6 = vld [vmem:[%s1038_s5 + $0x10] sm:$0xff]   ;;  %s881_s29 = scalar_lea.vmem %s880_s28, 8192  ;;  %p882_p1 = scmp.lt.s32.totalorder %s1149_s18, %s880_s28 }
  0x18   : > { %v860_v3 = vld [vmem:[%s1038_s5 + $0x40] sm:$0xff]   ;;  %766 = vmatprep.mubr.msk.bf16.mxu0 %vm338_vm1, %v859_v2  ;;  %v862_v5 = vld [vmem:[%s1038_s5 + $0x48] sm:$0xff]   ;;  %v864_v7 = vld [vmem:[%s1038_s5 + $0x50] sm:$0xff]   ;;  %p878_p0 = pneg %p877_p13  ;;  %p883_p2 = scmp.lt.s32.totalorder %s881_s29, %s875_s26 }
  0x19   : > { %782 = vmatprep.mubr.msk.bf16.mxu1 %vm338_vm1, %v860_v3  ;;  %767 = vmatmul.mubr.msk.bf16.vlgmr.msra.gmra.mxu0 %vm338_vm1, %v861_v4  ;;  %v865_v8 = vld [vmem:[%s1038_s5 + $0x18] sm:$0xff]   ;;  %v867_v10 = vld [vmem:[%s1038_s5 + $0x20] sm:$0xff]   ;;  %v869_v12 = vld [vmem:[%s1038_s5 + $0x28] sm:$0xff]  }
  0x1a   : > { %783 = vmatmul.mubr.msk.bf16.vlgmr.msra.gmra.mxu1 %vm338_vm1, %v862_v5  ;;  %770 = vmatprep.mubr.msk.bf16.mxu0 %vm338_vm1, %v863_v6  ;;  %v866_v9 = vld [vmem:[%s1038_s5 + $0x58] sm:$0xff]   ;;  %v868_v11 = vld [vmem:[%s1038_s5 + $0x60] sm:$0xff]   ;;  %v870_v13 = vld [vmem:[%s1038_s5 + $0x68] sm:$0xff]   ;;  %p884_p3 = por %p883_p2, %p882_p1 }
  0x1b   : > { %786 = vmatprep.mubr.msk.bf16.mxu1 %vm338_vm1, %v864_v7  ;;  %v871_v14 = vld [vmem:[%s1038_s5 + $0x30] sm:$0xff]   ;;  %v873_v16 = vld [vmem:[%s1038_s5 + $0x38] sm:$0xff]  }
  0x1c   : > { %v872_v15 = vld [vmem:[%s1038_s5 + $0x70] sm:$0xff]   ;;  %v874_v17 = vld [vmem:[%s1038_s5 + $0x78] sm:$0xff]   ;;  %p885_p5 = pnand %p884_p3, %p878_p0 }
  0x21   : > { %771 = vmatmul.mubr.msk.bf16.gmra.mxu0 %vm338_vm1, %v865_v8 }
  0x22   : > { %787 = vmatmul.mubr.msk.bf16.gmra.mxu1 %vm338_vm1, %v866_v9  ;;  %774 = vmatprep.mubr.msk.bf16.mxu0 %vm338_vm1, %v867_v10 }
  0x23   : > { %790 = vmatprep.mubr.msk.bf16.mxu1 %vm338_vm1, %v868_v11 }
  0x29   : > { %775 = vmatmul.mubr.msk.bf16.gmra.mxu0 %vm338_vm1, %v869_v12 }
  0x2a   : > { %791 = vmatmul.mubr.msk.bf16.gmra.mxu1 %vm338_vm1, %v870_v13  ;;  %778 = vmatprep.mubr.msk.bf16.mxu0 %vm338_vm1, %v871_v14 }
  0x2b   : > { %794 = vmatprep.mubr.msk.bf16.mxu1 %vm338_vm1, %v872_v15 }
  0x31   : > { %779 = vmatmul.mubr.msk.bf16.gmra.mxu0 %vm338_vm1, %v873_v16 }
  0x32   : > { %795 = vmatmul.mubr.msk.bf16.gmra.mxu1 %vm338_vm1, %v874_v17 }
  0xd9   : > { %v768_v19 = vpop.f32.mrf.mxu0 }
  0xda   : > { %v434_v20 = vadd.f32 %v768_v19, %v1078_v18  ;;  %v784_v21 = vpop.f32.mrf.mxu1 }
  0xdb   : > { %v498_v22 = vadd.f32 %v784_v21, %v1078_v18  ;;  %v425_v23 = vpop.f32.mrf.mxu0 }
  0xdc   : > { %554 = vst [vmem:[%s1082_s10 + $0x10] sm:$0xff] %v434_v20  ;;  %v426_v24 = vadd.f32 %v1078_v18, %v425_v23  ;;  %v489_v25 = vpop.f32.mrf.mxu1 }
  0xdd   : > { %570 = vst [vmem:[%s1082_s10 + $0x90] sm:$0xff] %v498_v22  ;;  %v490_v26 = vadd.f32 %v1078_v18, %v489_v25  ;;  %v769_v27 = vpop.f32.mrf.mxu0 }
  0xde   : > { %552 = vst [vmem:[%s1082_s10] sm:$0xff] %v426_v24  ;;  %v437_v28 = vadd.f32 %v769_v27, %v1078_v18  ;;  %v785_v29 = vpop.f32.mrf.mxu1 }
  0xdf   : > { %568 = vst [vmem:[%s1082_s10 + $0x80] sm:$0xff] %v490_v26  ;;  %v501_v30 = vadd.f32 %v785_v29, %v1078_v18  ;;  %v428_v31 = vpop.f32.mrf.mxu0 }
  0xe0   : > { %555 = vst [vmem:[%s1082_s10 + $0x18] sm:$0xff] %v437_v28  ;;  %v429_v32 = vadd.f32 %v1078_v18, %v428_v31  ;;  %v492_v33 = vpop.f32.mrf.mxu1 }
  0xe1   : > { %571 = vst [vmem:[%s1082_s10 + $0x98] sm:$0xff] %v501_v30  ;;  %v493_v34 = vadd.f32 %v1078_v18, %v492_v33  ;;  %v772_v35 = vpop.f32.mrf.mxu0 }
  0xe2   : > { %553 = vst [vmem:[%s1082_s10 + $0x8] sm:$0xff] %v429_v32  ;;  %v450_v36 = vadd.f32 %v772_v35, %v1078_v18  ;;  %v788_v37 = vpop.f32.mrf.mxu1 }
  0xe3   : > { %569 = vst [vmem:[%s1082_s10 + $0x88] sm:$0xff] %v493_v34  ;;  %v514_v38 = vadd.f32 %v788_v37, %v1078_v18  ;;  %v441_v39 = vpop.f32.mrf.mxu0 }
  0xe4   : > { %558 = vst [vmem:[%s1082_s10 + $0x30] sm:$0xff] %v450_v36  ;;  %v442_v40 = vadd.f32 %v1078_v18, %v441_v39  ;;  %v505_v41 = vpop.f32.mrf.mxu1 }
  0xe5   : > { %574 = vst [vmem:[%s1082_s10 + $0xb0] sm:$0xff] %v514_v38  ;;  %v506_v42 = vadd.f32 %v1078_v18, %v505_v41  ;;  %v773_v43 = vpop.f32.mrf.mxu0 }
  0xe6   : > { %556 = vst [vmem:[%s1082_s10 + $0x20] sm:$0xff] %v442_v40  ;;  %v453_v44 = vadd.f32 %v773_v43, %v1078_v18  ;;  %v789_v45 = vpop.f32.mrf.mxu1 }
  0xe7   : > { %572 = vst [vmem:[%s1082_s10 + $0xa0] sm:$0xff] %v506_v42  ;;  %v517_v46 = vadd.f32 %v789_v45, %v1078_v18  ;;  %v444_v47 = vpop.f32.mrf.mxu0 }
  0xe8   : > { %559 = vst [vmem:[%s1082_s10 + $0x38] sm:$0xff] %v453_v44  ;;  %v445_v48 = vadd.f32 %v1078_v18, %v444_v47  ;;  %v508_v49 = vpop.f32.mrf.mxu1 }
  0xe9   : > { %575 = vst [vmem:[%s1082_s10 + $0xb8] sm:$0xff] %v517_v46  ;;  %v509_v50 = vadd.f32 %v1078_v18, %v508_v49  ;;  %v776_v51 = vpop.f32.mrf.mxu0 }
  0xea   : > { %557 = vst [vmem:[%s1082_s10 + $0x28] sm:$0xff] %v445_v48  ;;  %v466_v52 = vadd.f32 %v776_v51, %v1078_v18  ;;  %v792_v53 = vpop.f32.mrf.mxu1 }
  0xeb   : > { %573 = vst [vmem:[%s1082_s10 + $0xa8] sm:$0xff] %v509_v50  ;;  %v530_v54 = vadd.f32 %v792_v53, %v1078_v18  ;;  %v457_v55 = vpop.f32.mrf.mxu0 }
  0xec   : > { %562 = vst [vmem:[%s1082_s10 + $0x50] sm:$0xff] %v466_v52  ;;  %v458_v56 = vadd.f32 %v1078_v18, %v457_v55  ;;  %v521_v57 = vpop.f32.mrf.mxu1 }
  0xed   : > { %578 = vst [vmem:[%s1082_s10 + $0xd0] sm:$0xff] %v530_v54  ;;  %v522_v58 = vadd.f32 %v1078_v18, %v521_v57  ;;  %v777_v59 = vpop.f32.mrf.mxu0 }
  0xee   : > { %560 = vst [vmem:[%s1082_s10 + $0x40] sm:$0xff] %v458_v56  ;;  %v469_v60 = vadd.f32 %v777_v59, %v1078_v18  ;;  %v793_v61 = vpop.f32.mrf.mxu1 }
  0xef   : > { %576 = vst [vmem:[%s1082_s10 + $0xc0] sm:$0xff] %v522_v58  ;;  %v533_v62 = vadd.f32 %v793_v61, %v1078_v18  ;;  %v460_v63 = vpop.f32.mrf.mxu0 }
  0xf0   : > { %563 = vst [vmem:[%s1082_s10 + $0x58] sm:$0xff] %v469_v60  ;;  %v461_v0 = vadd.f32 %v1078_v18, %v460_v63  ;;  %v524_v1 = vpop.f32.mrf.mxu1 }
  0xf1   : > { %579 = vst [vmem:[%s1082_s10 + $0xd8] sm:$0xff] %v533_v62  ;;  %v525_v2 = vadd.f32 %v1078_v18, %v524_v1  ;;  %v780_v3 = vpop.f32.mrf.mxu0 }
  0xf2   : > { %561 = vst [vmem:[%s1082_s10 + $0x48] sm:$0xff] %v461_v0  ;;  %v482_v4 = vadd.f32 %v780_v3, %v1078_v18  ;;  %v796_v5 = vpop.f32.mrf.mxu1 }
  0xf3   : > { %577 = vst [vmem:[%s1082_s10 + $0xc8] sm:$0xff] %v525_v2  ;;  %v546_v6 = vadd.f32 %v796_v5, %v1078_v18  ;;  %v473_v7 = vpop.f32.mrf.mxu0 }
  0xf4   : > { %566 = vst [vmem:[%s1082_s10 + $0x70] sm:$0xff] %v482_v4  ;;  %v474_v8 = vadd.f32 %v1078_v18, %v473_v7  ;;  %v537_v9 = vpop.f32.mrf.mxu1 }
  0xf5   : > { %582 = vst [vmem:[%s1082_s10 + $0xf0] sm:$0xff] %v546_v6  ;;  %v538_v10 = vadd.f32 %v1078_v18, %v537_v9  ;;  %v781_v11 = vpop.f32.mrf.mxu0 }
  0xf6   : > { %564 = vst [vmem:[%s1082_s10 + $0x60] sm:$0xff] %v474_v8  ;;  %v485_v12 = vadd.f32 %v781_v11, %v1078_v18  ;;  %v797_v13 = vpop.f32.mrf.mxu1 }
  0xf7   : > { %580 = vst [vmem:[%s1082_s10 + $0xe0] sm:$0xff] %v538_v10  ;;  %v549_v14 = vadd.f32 %v797_v13, %v1078_v18  ;;  %v476_v15 = vpop.f32.mrf.mxu0 }
  0xf8   : > { %567 = vst [vmem:[%s1082_s10 + $0x78] sm:$0xff] %v485_v12  ;;  %v477_v16 = vadd.f32 %v1078_v18, %v476_v15  ;;  %v540_v17 = vpop.f32.mrf.mxu1 }
  0xf9   : > { %583 = vst [vmem:[%s1082_s10 + $0xf8] sm:$0xff] %v549_v14  ;;  %v541_v19 = vadd.f32 %v1078_v18, %v540_v17 }
  0xfa   : > { %565 = vst [vmem:[%s1082_s10 + $0x68] sm:$0xff] %v477_v16 }
  0xfb   : > { %581 = vst [vmem:[%s1082_s10 + $0xe8] sm:$0xff] %v541_v19 }
  0xfc   : > { %888 = shalt.err (!%p885_p5)
}
  0xfd   : > { %s889_s30 = scalar_lea.hbm %s1147_s15, 4096  ;;  %s893_s6 = scalar_lea.hbm %s1205_s3, 8192 }
  0xfe   : > { %p890_p6 = scmp.ne.s32.totalorder %s1147_s15, %s889_s30  ;;  %p894_p10 = scmp.lt.s32.totalorder %s1147_s15, %s1205_s3 }
  0xff   : > { %p895_p11 = scmp.lt.s32.totalorder %s893_s6, %s889_s30 }
 0x100   : > { %p891_p7 = pnand %p890_p6, %p1016_p4 }
 0x101   : > { %p896_p12 = por %p895_p11, %p894_p10 }
 0x102   : > { %p892_p9 = pneg %p891_p7 }
 0x104   : > { %p897_p13 = pnand %p896_p12, %p892_p9 }
 0x106   : > { %900 = shalt.err (!%p897_p13)
}
 0x107   : > { %s954_s9 = smov 128   ;;  %s955_s10 = smov 8  }
 0x108   : > { %802 = dma.vmem_to_hbm [thread:$0]  (%p1016_p4), %s1149_s18, 4096, %s1147_s15, %s1157_s23, %s954_s9, %s954_s9, %s955_s10  }
 0x109 PF: > { %p808_p0 = scmp.ge.s32.totalorder %s951_s17, 2  ;;  %s614_s11 = sand.u32 1, %s931_s12  }
 0x10a   : > { %s615_s19 = scalar_lea.sflag [#allocation3], %s614_s11 }
 0x10b   : > { %p805_p1 = pnand %p808_p0, %p1023_p8 }
 0x10d   : > { %p806_p2 = pneg %p805_p1 }
 0x10f   : > { %926 = dma.done.wait (%p806_p2), %s615_s19, 4096  }
 0x110   : > { %928 = vsyncadd (%p806_p2), %s615_s19, 4294963200  ;;  %s16_s17 = sadd.s32 1, %s951_s17   ;;  %s1208_s12 = smov %s935_s13 }
 0x111   : > { %p13_p3 = scmp.ge.s32.totalorder %s16_s17, 4   ;;  %s1209_s13 = smov %s939_s14 }
 0x112   : > { %s1210_s14 = smov %s1029_s25  ;;  %s1211_s15 = smov %s947_s16 }
 0x113   : > { %s1212_s16 = smov %s1214_s20  ;;  %15 = sbr.rel (!%p13_p3) target bundleno = 4 (0x4), region = 73 }
 0x118   :  { %620 = vsyncpa [#allocation3], 1 }
 0x119   :  { %622 = vsyncpa [#allocation3 + $0x1], 1 }

</bundles_post_ra>
